<compile_context>
chip_gen: v7x
topology: tpu7x:2x2x1
jax: 0.10.0
libtpu: 0.0.40
codegen_flags: <defaults>
</compile_context>

<pallas_src>
import functools

import jax
import jax.numpy as jnp
from jax.experimental import pallas as pl
from jax.experimental.pallas import tpu as pltpu

# murmur3 fmix32 constants (as signed two's-complement int32)
_C1 = -2048144789          # 0x85EBCA6B
_C2 = -1028477387          # 0xC2B2AE35
_GOLDEN = -1640531527      # 0x9E3779B9

_MAX_BLOCK_ELEMS = 512 * 512   # ~1 MiB of f32 per block -> ~85% HBM roofline


def _build_encoding_table(max_seq_len: int, model_dim: int) -> jnp.ndarray:
    """Vectorized version of the PyTorch __init__ double loop."""
    pos = jnp.arange(max_seq_len, dtype=jnp.float32)[:, None]          # (L, 1)
    i = jnp.arange(model_dim)                                          # (D,)
    exponent = jnp.where(i % 2 == 0, i, i - 1).astype(jnp.float32) / model_dim
    angle = pos / (10000.0 ** exponent)[None, :]                       # (L, D)
    return jnp.where((i % 2 == 0)[None, :], jnp.sin(angle), jnp.cos(angle))


def _fmix32(h):
    """murmur3 finalizer on int32 bit patterns (wraps like uint32)."""
    h = h ^ jax.lax.shift_right_logical(h, jnp.int32(16))
    h = h * jnp.int32(_C1)
    h = h ^ jax.lax.shift_right_logical(h, jnp.int32(13))
    h = h * jnp.int32(_C2)
    h = h ^ jax.lax.shift_right_logical(h, jnp.int32(16))
    return h


def _pe_dropout_kernel(x_ref, pe_ref, o_ref, *,
                       dropout_p: float, threshold: int, scale: float,
                       base_seed: int, tile_rows: int, tile_cols: int):
    """x_ref: (tR, tC); pe_ref: (1, tC) broadcast over rows; o_ref: (tR, tC)."""
    y = x_ref[...].astype(jnp.float32) + pe_ref[...]                   # (tR, tC)

    if dropout_p > 0.0:
        c = pl.program_id(0)                                           # column tile (outer)
        r = pl.program_id(1)                                           # batch tile (inner)
        shape = (tile_rows, tile_cols)
        row_ids = jax.lax.broadcasted_iota(jnp.int32, shape, 0) + r * tile_rows
        col_ids = jax.lax.broadcasted_iota(jnp.int32, shape, 1) + c * tile_cols
        # stateless per-element hash: decorrelated across rows and columns
        h = _fmix32(row_ids * jnp.int32(_GOLDEN) + jnp.int32(base_seed))
        h = _fmix32(col_ids ^ h)
        rbits = h & jnp.int32(0x7FFFFFFF)                              # 31 uniform bits
        keep = rbits < jnp.int32(threshold)                            # P(keep) = 1 - p
        y = jnp.where(keep, y * scale, 0.0)

    o_ref[...] = y.astype(o_ref.dtype)


def _choose_tile(n: int, align: int, max_tile: int) -> int:
    """Largest divisor of n that is a multiple of `align` and <= max_tile.
    Falls back to the full dimension n (always legal for Pallas)."""
    if n <= max_tile:
        return n
    if n % align:
        return n
    t = (min(n, max_tile) // align) * align
    while t >= align:
        if n % t == 0:
            return t
        t -= align
    return n


def positional_encoding_forward(x, encoding_table, *, dropout_p: float, seed: int = 0):
    """x: (B, S, D); encoding_table: (max_seq_len, D) float32."""
    B, S, D = x.shape
    assert encoding_table.shape[1] == D, (
        f"model_dim mismatch: got {x.shape}, table {encoding_table.shape}")
    assert 0.0 <= dropout_p < 1.0, "dropout_p must be in [0, 1)"

    pe = encoding_table[:S, :]                                          # (S, D) glue slice
    N = S * D
    x2 = x.reshape(B, N)                                                # lane-dense layout
    pe2 = pe.reshape(1, N)

    # Tile sizes: full batch if small, column tiles are multiples of 128.
    tR = _choose_tile(B, 8, 256)
    col_cap = max(128, (_MAX_BLOCK_ELEMS // max(tR, 1)) // 128 * 128)
    tC = _choose_tile(N, 128, col_cap)
    grid = (N // tC, B // tR)                                           # (outer=cols, inner=batch)

    keep_prob = 1.0 - dropout_p
    threshold = min(int(round(keep_prob * float(2 ** 31))), 2 ** 31 - 1)
    scale = 1.0 / keep_prob if dropout_p > 0.0 else 1.0

    kernel = functools.partial(
        _pe_dropout_kernel,
        dropout_p=dropout_p, threshold=threshold, scale=scale,
        base_seed=int(seed) & 0x7FFFFFFF, tile_rows=tR, tile_cols=tC)

    out2 = pl.pallas_call(
        kernel,
        out_shape=jax.ShapeDtypeStruct((B, N), x.dtype),
        grid=grid,
        in_specs=[
            pl.BlockSpec((tR, tC), lambda c, r: (r, c)),     # x tile
            pl.BlockSpec((1, tC), lambda c, r: (0, c)),      # pe tile: depends only on c
        ],                                                   #   -> resident across inner batch loop
        out_specs=pl.BlockSpec((tR, tC), lambda c, r: (r, c)),
        compiler_params=pltpu.CompilerParams(
            dimension_semantics=("parallel", "parallel"),    # stateless RNG -> megacore OK
        ),
    )(x2, pe2)
    return out2.reshape(B, S, D)


if __name__ == "__main__":
    # Small shapes consistent with the module: (batch, vocab_len/seq, model_dim)
    B, S, D = 2, 8, 32
    MAX_SEQ_LEN = 64
    DROPOUT_P = 0.1

    key = jax.random.PRNGKey(0)
    x = jax.random.normal(key, (B, S, D), dtype=jnp.float32)

    enc_table = _build_encoding_table(MAX_SEQ_LEN, D)                  # deterministic "parameter"
    pe_b = enc_table[:S, :][None, :, :]

    # Training path (dropout active).
    out_train = jax.block_until_ready(
        positional_encoding_forward(x, enc_table, dropout_p=DROPOUT_P, seed=0))
    assert out_train.shape == (B, S, D) and out_train.dtype == jnp.float32

    # Every kept element must equal (x + pe) / keep_prob; dropped elements are 0.
    scaled = (x + pe_b) / (1.0 - DROPOUT_P)
    kept = out_train != 0.0
    assert jnp.allclose(jnp.where(kept, out_train - scaled, 0.0),
                        jnp.zeros_like(out_train), atol=1e-5), "kept values mismatch"
    drop_frac = 1.0 - jnp.mean(kept.astype(jnp.float32))
    assert 0.0 < float(drop_frac) < 0.5, f"implausible drop fraction {drop_frac}"

    # Eval path (dropout disabled) must equal the pure-JAX reference exactly.
    out_eval = jax.block_until_ready(
        positional_encoding_forward(x, enc_table, dropout_p=0.0, seed=0))
    ref_eval = x + pe_b
    assert jnp.allclose(out_eval, ref_eval, atol=1e-6), "mismatch vs reference"

    print("KERNEL_OK")
</pallas_src>

<mosaic_0001>
module attributes {stable_mosaic.version = 11 : i64} {
  func.func @_pe_dropout_kernel(%arg0: i32, %arg1: i32, %arg2: memref<2x256xf32, #tpu.memory_space<vmem>>, %arg3: memref<1x256xf32, #tpu.memory_space<vmem>>, %arg4: memref<2x256xf32, #tpu.memory_space<vmem>>) attributes {dimension_semantics = [#tpu.dimension_semantics<parallel>, #tpu.dimension_semantics<parallel>], iteration_bounds = array<i64: 1, 1>, scalar_prefetch = 0 : i64, scratch_operands = 0 : i64, tpu.core_type = #tpu.core_type<tc>, window_params = [{transform_indices = @transform_0, window_bounds = array<i64: 2, 256>}, {transform_indices = @transform_1, window_bounds = array<i64: 1, 256>}, {transform_indices = @transform_2, window_bounds = array<i64: 2, 256>}]} {
    %c0 = arith.constant 0 : index
    %c0_0 = arith.constant 0 : index
    %0 = vector.load %arg2[%c0, %c0_0] : memref<2x256xf32, #tpu.memory_space<vmem>>, vector<2x256xf32>
    %c0_1 = arith.constant 0 : index
    %c0_2 = arith.constant 0 : index
    %1 = vector.load %arg3[%c0_1, %c0_2] : memref<1x256xf32, #tpu.memory_space<vmem>>, vector<1x256xf32>
    %2 = vector.broadcast %1 : vector<1x256xf32> to vector<2x256xf32>
    %3 = arith.addf %0, %2 : vector<2x256xf32>
    %4 = tpu.iota {dimensions = array<i32: 0>} : vector<2x256xi32>
    %c2_i32 = arith.constant 2 : i32
    %5 = arith.muli %arg1, %c2_i32 : i32
    %6 = vector.broadcast %5 : i32 to vector<2x256xi32>
    %7 = arith.addi %4, %6 : vector<2x256xi32>
    %8 = tpu.iota {dimensions = array<i32: 1>} : vector<2x256xi32>
    %c256_i32 = arith.constant 256 : i32
    %9 = arith.muli %arg0, %c256_i32 : i32
    %10 = vector.broadcast %9 : i32 to vector<2x256xi32>
    %11 = arith.addi %8, %10 : vector<2x256xi32>
    %c-1640531527_i32 = arith.constant -1640531527 : i32
    %12 = vector.broadcast %c-1640531527_i32 : i32 to vector<2x256xi32>
    %13 = arith.muli %7, %12 : vector<2x256xi32>
    %c0_i32 = arith.constant 0 : i32
    %14 = vector.broadcast %c0_i32 : i32 to vector<2x256xi32>
    %15 = arith.addi %13, %14 : vector<2x256xi32>
    %c16_i32 = arith.constant 16 : i32
    %16 = vector.broadcast %c16_i32 : i32 to vector<2x256xi32>
    %17 = arith.shrui %15, %16 : vector<2x256xi32>
    %18 = arith.xori %15, %17 : vector<2x256xi32>
    %c-2048144789_i32 = arith.constant -2048144789 : i32
    %19 = vector.broadcast %c-2048144789_i32 : i32 to vector<2x256xi32>
    %20 = arith.muli %18, %19 : vector<2x256xi32>
    %c13_i32 = arith.constant 13 : i32
    %21 = vector.broadcast %c13_i32 : i32 to vector<2x256xi32>
    %22 = arith.shrui %20, %21 : vector<2x256xi32>
    %23 = arith.xori %20, %22 : vector<2x256xi32>
    %c-1028477387_i32 = arith.constant -1028477387 : i32
    %24 = vector.broadcast %c-1028477387_i32 : i32 to vector<2x256xi32>
    %25 = arith.muli %23, %24 : vector<2x256xi32>
    %c16_i32_3 = arith.constant 16 : i32
    %26 = vector.broadcast %c16_i32_3 : i32 to vector<2x256xi32>
    %27 = arith.shrui %25, %26 : vector<2x256xi32>
    %28 = arith.xori %25, %27 : vector<2x256xi32>
    %29 = arith.xori %11, %28 : vector<2x256xi32>
    %c16_i32_4 = arith.constant 16 : i32
    %30 = vector.broadcast %c16_i32_4 : i32 to vector<2x256xi32>
    %31 = arith.shrui %29, %30 : vector<2x256xi32>
    %32 = arith.xori %29, %31 : vector<2x256xi32>
    %c-2048144789_i32_5 = arith.constant -2048144789 : i32
    %33 = vector.broadcast %c-2048144789_i32_5 : i32 to vector<2x256xi32>
    %34 = arith.muli %32, %33 : vector<2x256xi32>
    %c13_i32_6 = arith.constant 13 : i32
    %35 = vector.broadcast %c13_i32_6 : i32 to vector<2x256xi32>
    %36 = arith.shrui %34, %35 : vector<2x256xi32>
    %37 = arith.xori %34, %36 : vector<2x256xi32>
    %c-1028477387_i32_7 = arith.constant -1028477387 : i32
    %38 = vector.broadcast %c-1028477387_i32_7 : i32 to vector<2x256xi32>
    %39 = arith.muli %37, %38 : vector<2x256xi32>
    %c16_i32_8 = arith.constant 16 : i32
    %40 = vector.broadcast %c16_i32_8 : i32 to vector<2x256xi32>
    %41 = arith.shrui %39, %40 : vector<2x256xi32>
    %42 = arith.xori %39, %41 : vector<2x256xi32>
    %c2147483647_i32 = arith.constant 2147483647 : i32
    %43 = vector.broadcast %c2147483647_i32 : i32 to vector<2x256xi32>
    %44 = arith.andi %42, %43 : vector<2x256xi32>
    %c1932735283_i32 = arith.constant 1932735283 : i32
    %45 = vector.broadcast %c1932735283_i32 : i32 to vector<2x256xi32>
    %46 = arith.cmpi slt, %44, %45 : vector<2x256xi32>
    %cst = arith.constant 1.11111116 : f32
    %47 = vector.broadcast %cst : f32 to vector<2x256xf32>
    %48 = arith.mulf %3, %47 : vector<2x256xf32>
    %cst_9 = arith.constant 0.000000e+00 : f32
    %49 = vector.broadcast %cst_9 : f32 to vector<2x256xf32>
    %50 = arith.select %46, %48, %49 : vector<2x256xi1>, vector<2x256xf32>
    %c0_10 = arith.constant 0 : index
    %c0_11 = arith.constant 0 : index
    %51 = vector.load %arg4[%c0_10, %c0_11] : memref<2x256xf32, #tpu.memory_space<vmem>>, vector<2x256xf32>
    tpu.vector_store %arg4[%c0_10, %c0_11], %50 {strides = array<i32>} : memref<2x256xf32, #tpu.memory_space<vmem>>, vector<2x256xf32>,
    return
  }
  func.func @transform_0(%arg0: i32, %arg1: i32) -> (i32, i32) {
    %c0_i32 = arith.constant 0 : i32
    return %arg1, %arg0 : i32, i32
  }
  func.func @transform_1(%arg0: i32, %arg1: i32) -> (i32, i32) {
    %c0_i32 = arith.constant 0 : i32
    %c0_i32_0 = arith.constant 0 : i32
    return %c0_i32, %arg0 : i32, i32
  }
  func.func @transform_2(%arg0: i32, %arg1: i32) -> (i32, i32) {
    %c0_i32 = arith.constant 0 : i32
    return %arg1, %arg0 : i32, i32
  }
}

</mosaic_0001>

<bundles_post_ra>
// kernel: tpu_custom_call.1
= control target key start
LH: loop header
LB: loop body
LE: loop exit
PB: predicated region body
PF: predicated region fallthrough
CT: control target
= control target key end

     0   :  { %7 = vsyncpa [#allocation3], 0  ;;  %s226_s0 = inlined_call_operand.hbm [shape: f32[2,256], index: 0, kind: input, shape index: {}]   ;;  %s227_s1 = inlined_call_operand.vmem [shape: f32[1,256], index: 1, kind: input, shape index: {}]   ;;  %s228_s2 = inlined_call_operand.hbm [shape: f32[2,256], index: 2, kind: output, shape index: {}]  }
   0x1   :  { %8 = vsyncpa [#allocation4], 0  ;;  %s181_s9 = smov [#allocation2]   ;;  %s133_s13 = scalar_lea.hbm %s226_s0, 64 }
   0x2   :  { %s15_s10 = sshll.u32 %s181_s9, 4  ;;  %p134_p0 = scmp.ne.s32.totalorder %s226_s0, %s133_s13  ;;  %s16_s10 = int_to_ptr.vmem [resolvable:$true] %s15_s10 }
   0x3   :  { %p137_p1 = scmp.lt.u32.totalorder %s133_s13, %s226_s0 }
   0x5   :  { %p139_p2 = pnand %p137_p1, %p134_p0 }
   0x7   :  { %142 = shalt.err (!%p139_p2)
}
   0x8   :  { %s143_s18 = scalar_lea.vmem %s16_s10, 64  ;;  %p148_p4 = scmp.lt.s32.totalorder %s16_s10, %s16_s10 }
   0x9   :  { %p144_p3 = scmp.ne.s32.totalorder %s16_s10, %s143_s18  ;;  %p149_p5 = scmp.lt.s32.totalorder %s143_s18, %s143_s18 }
   0xb   :  { %p150_p6 = por %p149_p5, %p148_p4 }
   0xd   :  { %p151_p7 = pnand %p150_p6, %p144_p3 }
   0xf   :  { %154 = shalt.err (!%p151_p7)
}
  0x10   :  { %18 = dma.hbm_to_vmem [thread:$0]  %s226_s0, 64, %s16_s10, [#allocation3]  }
  0x11   :  { %177 = dma.done.wait [#allocation3], 64  }
  0x12   :  { %178 = vsyncadd [#allocation3], 4294967232  ;;  %v27_v0 = vlaneseq  ;;  %v182_v8 = vmov 1983009808   ;;  %v25_v10 = vld [vmem:[%s227_s1] sm:$0x3] }
  0x13   :  { %v37_v9 = vunpack.c.l.s4 %v182_v8  ;;  %v24_v26 = vld [vmem:[#allocation2] sm:$0xf]  ;;  %s183_s0 = smov [#allocation5]  }
  0x14   :  { %v28_v1 = vshrl.u32 %v27_v0, 7  ;;  %v51_v12 = vand.u32 127, %v27_v0  ;;  %s120_s1 = sshll.u32 %s183_s0, 4  ;;  %s121_s1 = int_to_ptr.vmem [resolvable:$true] %s120_s1 }
  0x15   :  { %v38_v16 = vunpack.c.0.s8 %v37_v9  ;;  %s155_s23 = scalar_lea.vmem %s121_s1, 64  ;;  %p160_p9 = scmp.lt.s32.totalorder %s121_s1, %s121_s1 }
  0x16   :  { %v57_v2 = vmul.u32 2654435769, %v28_v1  ;;  %v29_v6 = vsub.s32 0, %v28_v1  ;;  %v33_v7 = vsub.s32 1, %v28_v1  ;;  %v52_v18 = vadd.s32 128, %v51_v12  ;;  %p156_p8 = scmp.ne.s32.totalorder %s121_s1, %s155_s23  ;;  %p161_p10 = scmp.lt.s32.totalorder %s155_s23, %s155_s23 }
  0x17   :  { %v41_v21 = vsub.s32 %v38_v16, %v28_v1 }
  0x18   :  { %v58_v3 = vshrl.u32 %v57_v2, 16  ;;  %v30_v14 = vrot.slane %v25_v10, %v29_v6  ;;  %v34_v15 = vrot.slane %v25_v10, %v33_v7  ;;  %p162_p11 = por %p161_p10, %p160_p9 }
  0x1a   :  { %v59_v4 = vxor.u32 %v58_v3, %v57_v2  ;;  %v35_v20 = vcombine.low %v30_v14, %v34_v15  ;;  %p163_p12 = pnand %p162_p11, %p156_p8 }
  0x1c   :  { %v60_v5 = vmul.u32 2246822507, %v59_v4  ;;  %v42_v25 = vrot.slane %v35_v20, %v41_v21 }
  0x1e   :  { %v61_v11 = vshrl.u32 %v60_v5, 13  ;;  %v44_v31 = vadd.f32 %v42_v25, %v24_v26 }
  0x20   :  { %v62_v13 = vxor.u32 %v61_v11, %v60_v5  ;;  %v88_v36 = vmul.f32 1.1111112, %v44_v31 }
  0x22   :  { %v63_v17 = vmul.u32 3266489909, %v62_v13  ;;  %v96_v41 = vrot.slane %v88_v36, %v41_v21 }
  0x24   :  { %v64_v19 = vshrl.u32 %v63_v17, 16  ;;  %v97_v46 = vcombine.high %v96_v41, %v96_v41 }
  0x26   :  { %v65_v22 = vxor.u32 %v64_v19, %v63_v17 }
  0x28   :  { %v66_v23 = vxor.u32 %v65_v22, %v51_v12  ;;  %v67_v24 = vxor.u32 %v65_v22, %v52_v18 }
  0x2a   :  { %v68_v27 = vshrl.u32 %v66_v23, 16  ;;  %v69_v28 = vshrl.u32 %v67_v24, 16 }
  0x2c   :  { %v70_v29 = vxor.u32 %v68_v27, %v66_v23  ;;  %v71_v30 = vxor.u32 %v69_v28, %v67_v24 }
  0x2e   :  { %v72_v32 = vmul.u32 2246822507, %v70_v29  ;;  %v73_v33 = vmul.u32 2246822507, %v71_v30 }
  0x30   :  { %v74_v34 = vshrl.u32 %v72_v32, 13  ;;  %v75_v35 = vshrl.u32 %v73_v33, 13 }
  0x32   :  { %v76_v37 = vxor.u32 %v74_v34, %v72_v32  ;;  %v77_v38 = vxor.u32 %v75_v35, %v73_v33 }
  0x34   :  { %v78_v39 = vmul.u32 3266489909, %v76_v37  ;;  %v79_v40 = vmul.u32 3266489909, %v77_v38 }
  0x36   :  { %v80_v42 = vshrl.u32 %v78_v39, 16  ;;  %v81_v43 = vshrl.u32 %v79_v40, 16 }
  0x38   :  { %v82_v44 = vxor.u32 %v80_v42, %v78_v39  ;;  %v83_v45 = vxor.u32 %v81_v43, %v79_v40 }
  0x3a   :  { %v84_v47 = vand.u32 2147483647, %v82_v44  ;;  %v85_v48 = vand.u32 2147483647, %v83_v45 }
  0x3c   :  { %vm86_vm0 = vcmp.lt.s32.totalorder %v84_v47, 1932735283  ;;  %vm87_vm1 = vcmp.lt.s32.totalorder %v85_v48, 1932735283 }
  0x3d   :  { %v100_v49 = vsel %vm86_vm0, %v96_v41, 0.0  ;;  %v101_v50 = vsel %vm87_vm1, %v97_v46, 0.0 }
  0x3e   :  { %v104_v51 = vcombine.low %v100_v49, %v101_v50 }
  0x40   :  { %129 = vst.sshfl [vmem:[#allocation5] sm:$0x33 pattern:$0x76325410] %v104_v51 }
  0x41   :  { %166 = shalt.err (!%p163_p12)
}
  0x42   :  { %s167_s26 = scalar_lea.hbm %s228_s2, 64 }
  0x43   :  { %p168_p13 = scmp.ne.s32.totalorder %s228_s2, %s167_s26  ;;  %p171_p0 = scmp.lt.u32.totalorder %s167_s26, %s228_s2 }
  0x45   :  { %p173_p1 = pnand %p171_p0, %p168_p13 }
  0x47   :  { %176 = shalt.err (!%p173_p1)
}
  0x48   :  { %123 = dma.vmem_to_hbm [thread:$0]  %s121_s1, 64, %s228_s2, [#allocation4]  }
  0x49   :  { %179 = dma.done.wait [#allocation4], 64  }
  0x4a   :  { %180 = vsyncadd [#allocation4], 4294967232 }
  0x4b   :  { %127 = vsyncpa [#allocation3], 1 }
  0x4c   :  { %128 = vsyncpa [#allocation4], 1 }

</bundles_post_ra>
